<compile_context>
chip_gen: v6e
topology: v6e:2x2x1
jax: 0.10.0
libtpu: 0.0.40
codegen_flags: <defaults>
</compile_context>

<pallas_src>
import functools

import jax
import jax.numpy as jnp
from jax.experimental import pallas as pl
from jax.experimental.pallas import tpu as pltpu


def _glu_mlp_kernel(x_ref, w1_ref, w2_ref, o_ref, acc_ref, *, ti):
    # x_ref:   (tm, H)      token tile (resident across the k / intermediate axis)
    # w1_ref:  (2*ti, H)    chunk-interleaved W1 slab: rows [:ti]=gate, [ti:]=value
    # w2_ref:  (ti, H)      W2 repacked to (I, H): rows k*ti..(k+1)*ti
    # o_ref:   (tm, H)      output tile (same block for all k -> accumulator pattern)
    # acc_ref: (tm, H)      f32 accumulator scratch
    k = pl.program_id(1)

    @pl.when(k == 0)
    def _():
        acc_ref[...] = jnp.zeros_like(acc_ref)

    x = x_ref[...]
    # One wide MXU matmul: (tm, H) x (2*ti, H)^T -> (tm, 2*ti), f32 accumulate.
    wide = jax.lax.dot_general(
        x, w1_ref[...], (((1,), (1,)), ((), ())),
        preferred_element_type=jnp.float32)
    gate = wide[:, :ti]          # static, lane-aligned slice (ti % 128 == 0)
    val = wide[:, ti:]

    # silu(g) = g * sigmoid(g); sigmoid via the exact tanh identity -> single EUP op.
    act = gate * (0.5 * jnp.tanh(0.5 * gate) + 0.5)
    y = (val * act).astype(w2_ref.dtype)

    # Canonical (M,K)x(K,N) matmul against the repacked W2 block.
    acc_ref[...] += jax.lax.dot_general(
        y, w2_ref[...], (((1,), (0,)), ((), ())),
        preferred_element_type=jnp.float32)

    @pl.when(k == pl.num_programs(1) - 1)
    def _():
        o_ref[...] = acc_ref[...].astype(o_ref.dtype)


def _round_up(x, m):
    return ((x + m - 1) // m) * m


def _cdiv(a, b):
    return -(-a // b)


def _generation_defaults():
    """(tm, ti, vmem_limit_bytes) tuned per TPU generation."""
    kind = ""
    vmem_cap = None
    try:
        kind = jax.devices()[0].device_kind.lower()
    except Exception:
        pass
    try:
        vmem_cap = getattr(pltpu.get_tpu_info(), "vmem_capacity_bytes", None)
    except Exception:
        vmem_cap = None

    if "v7" in kind or (vmem_cap is not None and vmem_cap <= 64 * 1024 * 1024):
        # v7x: 64 MiB VMEM/TC, ~3.2 TB/s HBM -> tm=512 reaches the roofline with
        # double-buffer headroom under a 48 MiB limit.
        return 512, 512, 48 * 1024 * 1024
    if "v6" in kind:
        # v6e: needs ~650 flop/byte on the streamed weights -> tm~1024; use the
        # 128 MiB VMEM that a fixed 48 MiB limit was leaving idle.
        return 1024, 512, 100 * 1024 * 1024
    if "v5" in kind:
        # v5e: near compute-bound at modest tm; a larger ti cuts per-step overhead
        # and f32 accumulator read-modify-write passes (only 1 vst slot).
        return 384, 1024, 100 * 1024 * 1024
    # Unknown generation: conservative middle ground.
    return 512, 512, 48 * 1024 * 1024


def _pack_weights(w1, w2, I, I_pad, ti, H):
    """One-time weight repack (hoist to weight-load time in production).

    w1 (2*I, H) torch layout -> (nk*2*ti, H): gate/value chunks interleaved so each
      k step is ONE contiguous (2*ti, H) DMA feeding both halves.
    w2 (H, I)   torch layout -> (I_pad, H): each k block (ti, H) is contiguous and
      the second matmul gets the canonical (K, N) RHS orientation.
    Zero-padded rows along I contribute exactly zero to the result.
    """
    nk = I_pad // ti
    pad_i = I_pad - I
    w1g = jnp.pad(w1[:I], ((0, pad_i), (0, 0)))
    w1v = jnp.pad(w1[I:], ((0, pad_i), (0, 0)))
    w1p = jnp.concatenate(
        [w1g.reshape(nk, ti, H), w1v.reshape(nk, ti, H)], axis=1
    ).reshape(nk * 2 * ti, H)
    w2p = jnp.pad(w2.T, ((0, pad_i), (0, 0)))          # (I_pad, H)
    return w1p, w2p


def samba_y_mlp(hidden_states, w1, w2, *, tm=None, ti=None, vmem_limit_bytes=None):
    """hidden_states: (B, S, H); w1: (2*I, H) torch layout; w2: (H, I) torch layout."""
    B, S, H = hidden_states.shape
    two_I, H1 = w1.shape
    assert H1 == H and two_I % 2 == 0
    I = two_I // 2
    assert w2.shape == (H, I)

    tm_d, ti_d, vmem_d = _generation_defaults()
    tm = tm_d if tm is None else tm
    ti = ti_d if ti is None else ti
    vmem_limit_bytes = vmem_d if vmem_limit_bytes is None else vmem_limit_bytes

    dsize = jnp.dtype(hidden_states.dtype).itemsize
    packing = {4: 8, 2: 16, 1: 32}.get(dsize, 8)      # sublane packing per dtype

    M = B * S
    x2d = hidden_states.reshape(M, H)

    # Token tile: respect sublane packing; avoid gross over-padding on ragged M
    # (e.g. a 260-row problem should not be padded to 512 rows).
    tm = max(tm, packing)
    if M <= tm:
        tm_eff = _round_up(M, packing)
    else:
        n_tiles = _cdiv(M, tm)
        tm_eff = _round_up(_cdiv(M, n_tiles), packing)

    # Intermediate-dim chunk: always a 128-multiple; I is zero-padded up to it.
    ti_eff = _round_up(min(ti, _round_up(I, 128)), 128)

    # Stay inside the VMEM budget (double-buffered inputs/outputs + f32 accumulator).
    def vmem_bytes(tm_, ti_):
        return (2 * tm_ * H * dsize            # x tile (double buffered)
                + 2 * 2 * ti_ * H * dsize      # W1 slab
                + 2 * ti_ * H * dsize          # W2 slab
                + 2 * tm_ * H * dsize          # out tile
                + tm_ * H * 4)                 # f32 accumulator scratch
    budget = int(0.85 * vmem_limit_bytes)
    while vmem_bytes(tm_eff, ti_eff) > budget and tm_eff > packing:
        tm_eff = max(packing, _round_up(tm_eff // 2, packing))
    while vmem_bytes(tm_eff, ti_eff) > budget and ti_eff > 128:
        ti_eff = max(128, _round_up(ti_eff // 2, 128))

    M_pad = _round_up(M, tm_eff)
    if M_pad != M:
        x2d = jnp.pad(x2d, ((0, M_pad - M), (0, 0)))

    I_pad = _round_up(I, ti_eff)
    nk = I_pad // ti_eff
    w1p, w2p = _pack_weights(w1, w2, I, I_pad, ti_eff, H)

    grid = (M_pad // tm_eff, nk)
    wsize = jnp.dtype(w1.dtype).itemsize
    cost = pl.CostEstimate(
        flops=6 * M_pad * I_pad * H,
        transcendentals=M_pad * I_pad,
        bytes_accessed=(2 * M_pad * H * dsize              # activations in + out
                        + grid[0] * 3 * I_pad * H * wsize  # weights re-streamed per token tile
                        ),
    )

    # TODO(synk): for v7x decode (M_pad // tm_eff < 2) split the k axis across the two
    # TensorCores (CORE_PARALLEL / core_map + cross-core partial-sum combine in
    # VMEM_SHARED) so each core streams half the weights; with the i axis "parallel"
    # only one core is used in that regime. Likewise, pl.Buffered(3) on the weight
    # BlockSpecs can absorb DMA jitter on v7x if xprof shows exposed DMA.
    kernel = functools.partial(_glu_mlp_kernel, ti=ti_eff)

    out2d = pl.pallas_call(
        kernel,
        out_shape=jax.ShapeDtypeStruct((M_pad, H), hidden_states.dtype),
        grid_spec=pltpu.PrefetchScalarGridSpec(
            num_scalar_prefetch=0,
            grid=grid,
            in_specs=[
                # token tile (constant over k -> stays resident, no re-DMA)
                pl.BlockSpec((tm_eff, H), lambda i, k: (i, 0)),
                # chunk-interleaved W1 slab k: one contiguous (2*ti, H) DMA
                pl.BlockSpec((2 * ti_eff, H), lambda i, k: (k, 0)),
                # repacked W2 slab k: one contiguous (ti, H) DMA
                pl.BlockSpec((ti_eff, H), lambda i, k: (k, 0)),
            ],
            out_specs=pl.BlockSpec((tm_eff, H), lambda i, k: (i, 0)),
            scratch_shapes=[pltpu.VMEM((tm_eff, H), jnp.float32)],
        ),
        compiler_params=pltpu.CompilerParams(
            dimension_semantics=("parallel", "arbitrary"),
            vmem_limit_bytes=vmem_limit_bytes,
        ),
        cost_estimate=cost,
    )(x2d, w1p, w2p)

    return out2d[:M].reshape(B, S, H)


def samba_y_mlp_reference(hidden_states, w1, w2):
    """Pure-JAX reference mirroring the PyTorch forward exactly."""
    y = jnp.einsum("bsh,oh->bso", hidden_states, w1)
    inter = w1.shape[0] // 2
    gate, val = y[..., :inter], y[..., inter:]
    y = val * jax.nn.silu(gate)
    return jnp.einsum("bsi,hi->bsh", y, w2)


if __name__ == "__main__":
    # Small, module-consistent shapes.
    batch, seq = 2, 8
    hidden_size = 128
    intermediate_size = 256

    key = jax.random.PRNGKey(0)
    kx, k1, k2 = jax.random.split(key, 3)

    hidden_states = jax.random.normal(kx, (batch, seq, hidden_size), jnp.float32)
    # Deterministic synthetic weights in torch nn.Linear layout (out, in).
    w1 = jax.random.normal(k1, (2 * intermediate_size, hidden_size), jnp.float32) * 0.02
    w2 = jax.random.normal(k2, (hidden_size, intermediate_size), jnp.float32) * 0.02

    out = jax.block_until_ready(samba_y_mlp(hidden_states, w1, w2))
    ref = samba_y_mlp_reference(hidden_states, w1, w2)
    assert out.shape == (batch, seq, hidden_size)
    assert jnp.allclose(out, ref, atol=1e-3, rtol=1e-3), "mismatch vs reference (f32)"

    # Ragged-M padding path + intermediate-dim streaming loop (nk=2).
    hs2 = jax.random.normal(jax.random.PRNGKey(1), (1, 5, hidden_size), jnp.float32)
    out2 = jax.block_until_ready(samba_y_mlp(hs2, w1, w2, ti=128))
    ref2 = samba_y_mlp_reference(hs2, w1, w2)
    assert out2.shape == hs2.shape
    assert jnp.allclose(out2, ref2, atol=1e-3, rtol=1e-3), "mismatch vs reference (ragged)"

    # Intermediate size NOT a multiple of the chunk -> zero-padding path (replaces fallback).
    I_odd = 200
    w1_odd = jax.random.normal(jax.random.PRNGKey(2), (2 * I_odd, hidden_size), jnp.float32) * 0.02
    w2_odd = jax.random.normal(jax.random.PRNGKey(3), (hidden_size, I_odd), jnp.float32) * 0.02
    out3 = jax.block_until_ready(samba_y_mlp(hidden_states, w1_odd, w2_odd, ti=128))
    ref3 = samba_y_mlp_reference(hidden_states, w1_odd, w2_odd)
    assert jnp.allclose(out3, ref3, atol=1e-3, rtol=1e-3), "mismatch vs reference (padded I)"

    # bf16 (production) dtype path end-to-end.
    out_bf16 = jax.block_until_ready(
        samba_y_mlp(hidden_states.astype(jnp.bfloat16),
                    w1.astype(jnp.bfloat16), w2.astype(jnp.bfloat16)))
    assert out_bf16.shape == (batch, seq, hidden_size)
    assert bool(jnp.all(jnp.isfinite(out_bf16.astype(jnp.float32))))

    print("KERNEL_OK")
</pallas_src>

<mosaic_0001>
module attributes {stable_mosaic.version = 11 : i64} {
  func.func @_glu_mlp_kernel(%arg0: i32, %arg1: i32, %arg2: memref<16x128xf32, #tpu.memory_space<vmem>>, %arg3: memref<512x128xf32, #tpu.memory_space<vmem>>, %arg4: memref<256x128xf32, #tpu.memory_space<vmem>>, %arg5: memref<16x128xf32, #tpu.memory_space<vmem>>, %arg6: memref<16x128xf32, #tpu.memory_space<vmem>>) attributes {dimension_semantics = [#tpu.dimension_semantics<parallel>, #tpu.dimension_semantics<arbitrary>], iteration_bounds = array<i64: 1, 1>, scalar_prefetch = 0 : i64, scratch_operands = 1 : i64, tpu.core_type = #tpu.core_type<tc>, window_params = [{transform_indices = @transform_0, window_bounds = array<i64: 16, 128>}, {transform_indices = @transform_1, window_bounds = array<i64: 512, 128>}, {transform_indices = @transform_2, window_bounds = array<i64: 256, 128>}, {transform_indices = @transform_3, window_bounds = array<i64: 16, 128>}]} {
    %c0_i32 = arith.constant 0 : i32
    %0 = arith.cmpi eq, %arg1, %c0_i32 : i32
    %1 = arith.extui %0 : i1 to i32
    %c0_i32_0 = arith.constant 0 : i32
    %2 = arith.cmpi ne, %1, %c0_i32_0 : i32
    scf.if %2 {
      %cst_16 = arith.constant 0.000000e+00 : f32
      %25 = vector.broadcast %cst_16 : f32 to vector<16x128xf32>
      %c0_17 = arith.constant 0 : index
      %c0_18 = arith.constant 0 : index
      %26 = vector.load %arg6[%c0_17, %c0_18] : memref<16x128xf32, #tpu.memory_space<vmem>>, vector<16x128xf32>
      tpu.vector_store %arg6[%c0_17, %c0_18], %25 {strides = array<i32>} : memref<16x128xf32, #tpu.memory_space<vmem>>, vector<16x128xf32>,
    } else {
    }
    %c0 = arith.constant 0 : index
    %c0_1 = arith.constant 0 : index
    %3 = vector.load %arg2[%c0, %c0_1] : memref<16x128xf32, #tpu.memory_space<vmem>>, vector<16x128xf32>
    %c0_2 = arith.constant 0 : index
    %c0_3 = arith.constant 0 : index
    %4 = vector.load %arg3[%c0_2, %c0_3] : memref<512x128xf32, #tpu.memory_space<vmem>>, vector<512x128xf32>
    %cst = arith.constant dense<0.000000e+00> : vector<16x512xf32>
    %5 = tpu.matmul %3, %4, %cst {dimension_numbers = #tpu.dot_dimension_numbers<[1], [1], [0], [0], [0, 0, 1, 0], [], []>} : vector<16x128xf32>, vector<512x128xf32>, vector<16x512xf32> -> vector<16x512xf32>
    %6 = vector.extract_strided_slice %5 {offsets = [0, 0], sizes = [16, 256], strides = [1, 1]} : vector<16x512xf32> to vector<16x256xf32>
    %7 = vector.extract_strided_slice %5 {offsets = [0, 256], sizes = [16, 256], strides = [1, 1]} : vector<16x512xf32> to vector<16x256xf32>
    %cst_4 = arith.constant 5.000000e-01 : f32
    %8 = vector.broadcast %cst_4 : f32 to vector<16x256xf32>
    %9 = arith.mulf %8, %6 : vector<16x256xf32>
    %10 = math.tanh %9 : vector<16x256xf32>
    %cst_5 = arith.constant 5.000000e-01 : f32
    %11 = vector.broadcast %cst_5 : f32 to vector<16x256xf32>
    %12 = arith.mulf %11, %10 : vector<16x256xf32>
    %cst_6 = arith.constant 5.000000e-01 : f32
    %13 = vector.broadcast %cst_6 : f32 to vector<16x256xf32>
    %14 = arith.addf %12, %13 : vector<16x256xf32>
    %15 = arith.mulf %6, %14 : vector<16x256xf32>
    %16 = arith.mulf %7, %15 : vector<16x256xf32>
    %c0_7 = arith.constant 0 : index
    %c0_8 = arith.constant 0 : index
    %17 = vector.load %arg6[%c0_7, %c0_8] : memref<16x128xf32, #tpu.memory_space<vmem>>, vector<16x128xf32>
    %c0_9 = arith.constant 0 : index
    %c0_10 = arith.constant 0 : index
    %18 = vector.load %arg4[%c0_9, %c0_10] : memref<256x128xf32, #tpu.memory_space<vmem>>, vector<256x128xf32>
    %cst_11 = arith.constant dense<0.000000e+00> : vector<16x128xf32>
    %19 = tpu.matmul %16, %18, %cst_11 {dimension_numbers = #tpu.dot_dimension_numbers<[1], [0], [0], [1], [0, 0, 1, 1], [], []>} : vector<16x256xf32>, vector<256x128xf32>, vector<16x128xf32> -> vector<16x128xf32>
    %20 = arith.addf %17, %19 : vector<16x128xf32>
    %c0_12 = arith.constant 0 : index
    %c0_13 = arith.constant 0 : index
    %21 = vector.load %arg6[%c0_12, %c0_13] : memref<16x128xf32, #tpu.memory_space<vmem>>, vector<16x128xf32>
    tpu.vector_store %arg6[%c0_12, %c0_13], %20 {strides = array<i32>} : memref<16x128xf32, #tpu.memory_space<vmem>>, vector<16x128xf32>,
    %c0_i32_14 = arith.constant 0 : i32
    %22 = arith.cmpi eq, %arg1, %c0_i32_14 : i32
    %23 = arith.extui %22 : i1 to i32
    %c0_i32_15 = arith.constant 0 : i32
    %24 = arith.cmpi ne, %23, %c0_i32_15 : i32
    scf.if %24 {
      %c0_16 = arith.constant 0 : index
      %c0_17 = arith.constant 0 : index
      %25 = vector.load %arg6[%c0_16, %c0_17] : memref<16x128xf32, #tpu.memory_space<vmem>>, vector<16x128xf32>
      %c0_18 = arith.constant 0 : index
      %c0_19 = arith.constant 0 : index
      %26 = vector.load %arg5[%c0_18, %c0_19] : memref<16x128xf32, #tpu.memory_space<vmem>>, vector<16x128xf32>
      tpu.vector_store %arg5[%c0_18, %c0_19], %25 {strides = array<i32>} : memref<16x128xf32, #tpu.memory_space<vmem>>, vector<16x128xf32>,
    } else {
    }
    return
  }
  func.func @transform_0(%arg0: i32, %arg1: i32) -> (i32, i32) {
    %c0_i32 = arith.constant 0 : i32
    %c0_i32_0 = arith.constant 0 : i32
    return %arg0, %c0_i32 : i32, i32
  }
  func.func @transform_1(%arg0: i32, %arg1: i32) -> (i32, i32) {
    %c0_i32 = arith.constant 0 : i32
    %c0_i32_0 = arith.constant 0 : i32
    return %arg1, %c0_i32 : i32, i32
  }
  func.func @transform_2(%arg0: i32, %arg1: i32) -> (i32, i32) {
    %c0_i32 = arith.constant 0 : i32
    %c0_i32_0 = arith.constant 0 : i32
    return %arg1, %c0_i32 : i32, i32
  }
  func.func @transform_3(%arg0: i32, %arg1: i32) -> (i32, i32) {
    %c0_i32 = arith.constant 0 : i32
    %c0_i32_0 = arith.constant 0 : i32
    return %arg0, %c0_i32 : i32, i32
  }
}

</mosaic_0001>

<bundles_post_ra>
// kernel: tpu_custom_call.1
= control target key start
LH: loop header
LB: loop body
LE: loop exit
PB: predicated region body
PF: predicated region fallthrough
CT: control target
= control target key end

     0   :  { %8 = vsyncpa [#allocation4], 0  ;;  %s742_s0 = inlined_call_operand.hbm [shape: f32[16,128], index: 0, kind: input, shape index: {}]   ;;  %s743_s1 = inlined_call_operand.hbm [shape: f32[512,128], index: 1, kind: input, shape index: {}]   ;;  %s744_s2 = inlined_call_operand.hbm [shape: f32[256,128], index: 2, kind: input, shape index: {}]   ;;  %s745_s3 = inlined_call_operand.hbm [shape: f32[16,128], index: 3, kind: output, shape index: {}]  }
   0x1   :  { %9 = vsyncpa [#allocation7], 0 }
   0x2   :  { %10 = vsyncpa [#allocation5], 0  ;;  %s686_s12 = smov [#allocation6]   ;;  %s687_s14 = smov [#allocation3]  }
   0x3   :  { %s28_s13 = sshll.u32 %s686_s12, 4  ;;  %s16_s15 = sshll.u32 %s687_s14, 4  ;;  %s29_s13 = int_to_ptr.vmem [resolvable:$true] %s28_s13  ;;  %s17_s15 = int_to_ptr.vmem [resolvable:$true] %s16_s15 }
   0x4   :  { %s608_s16 = scalar_lea.vmem %s29_s13, 8192  ;;  %p613_p1 = scmp.lt.s32.totalorder %s29_s13, %s29_s13 }
   0x5   :  { %p609_p0 = scmp.ne.s32.totalorder %s29_s13, %s608_s16  ;;  %p614_p2 = scmp.lt.s32.totalorder %s608_s16, %s608_s16 }
   0x7   :  { %p615_p3 = por %p614_p2, %p613_p1 }
   0x9   :  { %p616_p4 = pnand %p615_p3, %p609_p0 }
   0xb   :  { %619 = shalt.err (!%p616_p4)
}
   0xc   :  { %s688_s17 = smov 128   ;;  %s689_s18 = smov 8  }
   0xd   :  { %34 = dma.hbm_to_vmem [thread:$0]  %s743_s1, 8192, %s29_s13, [#allocation7], %s688_s17, %s688_s17, %s689_s18  }
   0xe   :  { %s628_s21 = scalar_lea.vmem %s17_s15, 256  ;;  %p633_p6 = scmp.lt.s32.totalorder %s17_s15, %s17_s15 }
   0xf   :  { %p629_p5 = scmp.ne.s32.totalorder %s17_s15, %s628_s21  ;;  %p634_p7 = scmp.lt.s32.totalorder %s628_s21, %s628_s21 }
  0x11   :  { %p635_p8 = por %p634_p7, %p633_p6 }
  0x13   :  { %p636_p9 = pnand %p635_p8, %p629_p5 }
  0x15   :  { %639 = shalt.err (!%p636_p9)
}
  0x16   :  { %22 = dma.hbm_to_vmem [thread:$0]  %s742_s0, 256, %s17_s15, [#allocation4], %s688_s17, %s688_s17, %s689_s18  }
  0x17   :  { %s690_s24 = smov [#allocation8]  }
  0x18   :  { %s40_s25 = sshll.u32 %s690_s24, 4  ;;  %s41_s25 = int_to_ptr.vmem [resolvable:$true] %s40_s25 }
  0x19   :  { %s648_s26 = scalar_lea.vmem %s41_s25, 4096  ;;  %p653_p11 = scmp.lt.s32.totalorder %s41_s25, %s41_s25 }
  0x1a   :  { %p649_p10 = scmp.ne.s32.totalorder %s41_s25, %s648_s26  ;;  %p654_p12 = scmp.lt.s32.totalorder %s648_s26, %s648_s26 }
  0x1c   :  { %p655_p13 = por %p654_p12, %p653_p11 }
  0x1e   :  { %p656_p0 = pnand %p655_p13, %p649_p10 }
  0x20   :  { %659 = shalt.err (!%p656_p0)
}
  0x21   :  { %46 = dma.hbm_to_vmem [thread:$0]  %s744_s2, 4096, %s41_s25, [#allocation7], %s688_s17, %s688_s17, %s689_s18  }
  0x22   :  { %680 = dma.done.wait [#allocation4], 256  }
  0x23   :  { %681 = vsyncadd [#allocation4], 4294967040 }
  0x24   :  { %682 = dma.done.wait [#allocation7], 12288  }
  0x25   :  { %683 = vsyncadd [#allocation7], 4294955008  ;;  %v95_v0 = vld [vmem:[#allocation6 + $0xf8] sm:$0xff]  ;;  %v94_v2 = vld [vmem:[#allocation6 + $0xf0] sm:$0xff]  ;;  %s691_s0 = smov [#allocation9]  }
  0x26   :  { %v79_v1 = vld [vmem:[#allocation6 + $0x78] sm:$0xff]  ;;  %444 = vmatprep.subr.mxu0 %v95_v0  ;;  %v78_v3 = vld [vmem:[#allocation6 + $0x70] sm:$0xff]  ;;  %v93_v5 = vld [vmem:[#allocation6 + $0xe8] sm:$0xff]  ;;  %s431_s2 = sshll.u32 %s691_s0, 4  ;;  %s432_s2 = int_to_ptr.vmem [resolvable:$true] %s431_s2 }
  0x27   :  { %445 = vmatpush3.xpose.msra.mxu0 %v79_v1  ;;  %v127_v4 = vld [vmem:[#allocation6 + $0x1f8] sm:$0xff]  ;;  %v126_v7 = vld [vmem:[#allocation6 + $0x1f0] sm:$0xff]  ;;  %v77_v9 = vld [vmem:[#allocation6 + $0x68] sm:$0xff]  ;;  %s660_s28 = scalar_lea.vmem %s432_s2, 256  ;;  %p665_p2 = scmp.lt.s32.totalorder %s432_s2, %s432_s2 }
  0x28   :  { %446 = vmatprep.subr.mxu0 %v94_v2  ;;  %480 = vmatprep.subr.mxu1 %v127_v4  ;;  %v111_v6 = vld [vmem:[#allocation6 + $0x178] sm:$0xff]  ;;  %v110_v8 = vld [vmem:[#allocation6 + $0x170] sm:$0xff]  ;;  %v125_v10 = vld [vmem:[#allocation6 + $0x1e8] sm:$0xff]  ;;  %p661_p1 = scmp.ne.s32.totalorder %s432_s2, %s660_s28  ;;  %p666_p3 = scmp.lt.s32.totalorder %s660_s28, %s660_s28 }
  0x29   :  { %481 = vmatpush3.xpose.msra.mxu1 %v111_v6  ;;  %v92_v11 = vld [vmem:[#allocation6 + $0xe0] sm:$0xff]  ;;  %v109_v12 = vld [vmem:[#allocation6 + $0x168] sm:$0xff]  ;;  %v91_v15 = vld [vmem:[#allocation6 + $0xd8] sm:$0xff] }
  0x2a   :  { %482 = vmatprep.subr.mxu1 %v126_v7  ;;  %v76_v13 = vld [vmem:[#allocation6 + $0x60] sm:$0xff]  ;;  %v75_v17 = vld [vmem:[#allocation6 + $0x58] sm:$0xff]  ;;  %v90_v19 = vld [vmem:[#allocation6 + $0xd0] sm:$0xff]  ;;  %p667_p4 = por %p666_p3, %p665_p2 }
  0x2b   :  { %447 = vmatpush3.xpose.msra.mxu0 %v78_v3  ;;  %v124_v14 = vld [vmem:[#allocation6 + $0x1e0] sm:$0xff]  ;;  %v123_v18 = vld [vmem:[#allocation6 + $0x1d8] sm:$0xff]  ;;  %v730_v21 = vld [vmem:[#allocation3] sm:$0xff] }
  0x2c   :  { %448 = vmatprep.subr.mxu0 %v93_v5  ;;  %v108_v16 = vld [vmem:[#allocation6 + $0x160] sm:$0xff]  ;;  %v107_v20 = vld [vmem:[#allocation6 + $0x158] sm:$0xff]  ;;  %v74_v22 = vld [vmem:[#allocation6 + $0x50] sm:$0xff]  ;;  %476 = vmatprep.mubr.f32.mxu0 %v730_v21  ;;  %p668_p5 = pnand %p667_p4, %p661_p1 }
  0x2d   :  { %483 = vmatpush3.xpose.msra.mxu1 %v110_v8  ;;  %v122_v23 = vld [vmem:[#allocation6 + $0x1d0] sm:$0xff]  ;;  %v89_v24 = vld [vmem:[#allocation6 + $0xc8] sm:$0xff]  ;;  %512 = vmatprep.mubr.f32.mxu1 %v730_v21  ;;  %v88_v28 = vld [vmem:[#allocation6 + $0xc0] sm:$0xff] }
  0x2e   :  { %484 = vmatprep.subr.mxu1 %v125_v10  ;;  %v106_v25 = vld [vmem:[#allocation6 + $0x150] sm:$0xff]  ;;  %v73_v26 = vld [vmem:[#allocation6 + $0x48] sm:$0xff]  ;;  %v72_v30 = vld [vmem:[#allocation6 + $0x40] sm:$0xff] }
  0x2f   :  { %449 = vmatpush3.xpose.msra.mxu0 %v77_v9  ;;  %v121_v27 = vld [vmem:[#allocation6 + $0x1c8] sm:$0xff]  ;;  %v120_v31 = vld [vmem:[#allocation6 + $0x1c0] sm:$0xff]  ;;  %v87_v32 = vld [vmem:[#allocation6 + $0xb8] sm:$0xff] }
  0x30   :  { %450 = vmatprep.subr.mxu0 %v92_v11  ;;  %v105_v29 = vld [vmem:[#allocation6 + $0x148] sm:$0xff]  ;;  %v104_v33 = vld [vmem:[#allocation6 + $0x140] sm:$0xff]  ;;  %v71_v34 = vld [vmem:[#allocation6 + $0x38] sm:$0xff] }
  0x31   :  { %485 = vmatpush3.xpose.msra.mxu1 %v109_v12  ;;  %v119_v35 = vld [vmem:[#allocation6 + $0x1b8] sm:$0xff]  ;;  %v86_v36 = vld [vmem:[#allocation6 + $0xb0] sm:$0xff]  ;;  %v85_v40 = vld [vmem:[#allocation6 + $0xa8] sm:$0xff] }
  0x32   :  { %486 = vmatprep.subr.mxu1 %v124_v14  ;;  %v103_v37 = vld [vmem:[#allocation6 + $0x138] sm:$0xff]  ;;  %v70_v38 = vld [vmem:[#allocation6 + $0x30] sm:$0xff]  ;;  %v69_v42 = vld [vmem:[#allocation6 + $0x28] sm:$0xff] }
  0x33   :  { %451 = vmatpush3.xpose.msra.mxu0 %v76_v13  ;;  %v118_v39 = vld [vmem:[#allocation6 + $0x1b0] sm:$0xff]  ;;  %v117_v43 = vld [vmem:[#allocation6 + $0x1a8] sm:$0xff]  ;;  %v84_v44 = vld [vmem:[#allocation6 + $0xa0] sm:$0xff] }
  0x34   :  { %452 = vmatprep.subr.mxu0 %v91_v15  ;;  %v102_v41 = vld [vmem:[#allocation6 + $0x130] sm:$0xff]  ;;  %v101_v45 = vld [vmem:[#allocation6 + $0x128] sm:$0xff]  ;;  %v68_v46 = vld [vmem:[#allocation6 + $0x20] sm:$0xff] }
  0x35   :  { %487 = vmatpush3.xpose.msra.mxu1 %v108_v16  ;;  %v116_v47 = vld [vmem:[#allocation6 + $0x1a0] sm:$0xff]  ;;  %v83_v48 = vld [vmem:[#allocation6 + $0x98] sm:$0xff]  ;;  %v82_v52 = vld [vmem:[#allocation6 + $0x90] sm:$0xff] }
  0x36   :  { %488 = vmatprep.subr.mxu1 %v123_v18  ;;  %v100_v49 = vld [vmem:[#allocation6 + $0x120] sm:$0xff]  ;;  %v67_v50 = vld [vmem:[#allocation6 + $0x18] sm:$0xff]  ;;  %v66_v54 = vld [vmem:[#allocation6 + $0x10] sm:$0xff] }
  0x37   :  { %453 = vmatpush3.xpose.msra.mxu0 %v75_v17  ;;  %v115_v51 = vld [vmem:[#allocation6 + $0x198] sm:$0xff]  ;;  %v114_v55 = vld [vmem:[#allocation6 + $0x190] sm:$0xff]  ;;  %v81_v56 = vld [vmem:[#allocation6 + $0x88] sm:$0xff] }
  0x38   :  { %454 = vmatprep.subr.mxu0 %v90_v19  ;;  %v99_v53 = vld [vmem:[#allocation6 + $0x118] sm:$0xff]  ;;  %v98_v57 = vld [vmem:[#allocation6 + $0x110] sm:$0xff]  ;;  %v65_v58 = vld [vmem:[#allocation6 + $0x8] sm:$0xff] }
  0x39   :  { %489 = vmatpush3.xpose.msra.mxu1 %v107_v20  ;;  %v113_v59 = vld [vmem:[#allocation6 + $0x188] sm:$0xff]  ;;  %v80_v60 = vld [vmem:[#allocation6 + $0x80] sm:$0xff]  ;;  %v339_v0 = vld [vmem:[#allocation8 + $0xf8] sm:$0xff] }
  0x3a   :  { %490 = vmatprep.subr.mxu1 %v122_v23  ;;  %v97_v61 = vld [vmem:[#allocation6 + $0x108] sm:$0xff]  ;;  %v64_v62 = vld [vmem:[#allocation6] sm:$0xff]  ;;  %v63_v2 = vld [vmem:[#allocation3 + $0x8] sm:$0xff] }
  0x3b   :  { %455 = vmatpush3.xpose.msra.mxu0 %v74_v22  ;;  %v112_v63 = vld [vmem:[#allocation6 + $0x180] sm:$0xff]  ;;  %v323_v3 = vld [vmem:[#allocation8 + $0x78] sm:$0xff]  ;;  %v338_v4 = vld [vmem:[#allocation8 + $0xf0] sm:$0xff] }
  0x3c   :  { %456 = vmatprep.subr.mxu0 %v89_v24  ;;  %v96_v1 = vld [vmem:[#allocation6 + $0x100] sm:$0xff]  ;;  %v322_v5 = vld [vmem:[#allocation8 + $0x70] sm:$0xff]  ;;  %v337_v6 = vld [vmem:[#allocation8 + $0xe8] sm:$0xff] }
  0x3d   :  { %491 = vmatpush3.xpose.msra.mxu1 %v106_v25  ;;  %v321_v7 = vld [vmem:[#allocation8 + $0x68] sm:$0xff]  ;;  %v336_v8 = vld [vmem:[#allocation8 + $0xe0] sm:$0xff]  ;;  %v335_v10 = vld [vmem:[#allocation8 + $0xd8] sm:$0xff] }
  0x3e   :  { %492 = vmatprep.subr.mxu1 %v121_v27  ;;  %v320_v9 = vld [vmem:[#allocation8 + $0x60] sm:$0xff]  ;;  %v319_v11 = vld [vmem:[#allocation8 + $0x58] sm:$0xff]  ;;  %v334_v12 = vld [vmem:[#allocation8 + $0xd0] sm:$0xff] }
  0x3f   :  { %457 = vmatpush3.xpose.msra.mxu0 %v73_v26  ;;  %v318_v13 = vld [vmem:[#allocation8 + $0x50] sm:$0xff]  ;;  %v333_v14 = vld [vmem:[#allocation8 + $0xc8] sm:$0xff]  ;;  %v332_v16 = vld [vmem:[#allocation8 + $0xc0] sm:$0xff] }
  0x40   :  { %458 = vmatprep.subr.mxu0 %v88_v28  ;;  %v317_v15 = vld [vmem:[#allocation8 + $0x48] sm:$0xff]  ;;  %v316_v17 = vld [vmem:[#allocation8 + $0x40] sm:$0xff]  ;;  %v331_v18 = vld [vmem:[#allocation8 + $0xb8] sm:$0xff] }
  0x41   :  { %493 = vmatpush3.xpose.msra.mxu1 %v105_v29  ;;  %v315_v19 = vld [vmem:[#allocation8 + $0x38] sm:$0xff]  ;;  %v330_v20 = vld [vmem:[#allocation8 + $0xb0] sm:$0xff]  ;;  %v329_v22 = vld [vmem:[#allocation8 + $0xa8] sm:$0xff] }
  0x42   :  { %494 = vmatprep.subr.mxu1 %v120_v31  ;;  %v313_v23 = vld [vmem:[#allocation8 + $0x28] sm:$0xff]  ;;  %v328_v24 = vld [vmem:[#allocation8 + $0xa0] sm:$0xff]  ;;  %v327_v26 = vld [vmem:[#allocation8 + $0x98] sm:$0xff] }
  0x43   :  { %459 = vmatpush3.xpose.msra.mxu0 %v72_v30  ;;  %v312_v25 = vld [vmem:[#allocation8 + $0x20] sm:$0xff]  ;;  %v311_v27 = vld [vmem:[#allocation8 + $0x18] sm:$0xff]  ;;  %v326_v28 = vld [vmem:[#allocation8 + $0x90] sm:$0xff] }
  0x44   :  { %460 = vmatprep.subr.mxu0 %v87_v32  ;;  %v310_v29 = vld [vmem:[#allocation8 + $0x10] sm:$0xff]  ;;  %v325_v30 = vld [vmem:[#allocation8 + $0x88] sm:$0xff]  ;;  %v324_v32 = vld [vmem:[#allocation8 + $0x80] sm:$0xff] }
  0x45   :  { %495 = vmatpush3.xpose.msra.mxu1 %v104_v33  ;;  %v309_v31 = vld [vmem:[#allocation8 + $0x8] sm:$0xff]  ;;  %v308_v33 = vld [vmem:[#allocation8] sm:$0xff] }
  0x46   :  { %496 = vmatprep.subr.mxu1 %v119_v35 }
  0x47   :  { %461 = vmatpush3.xpose.msra.mxu0 %v71_v34 }
  0x48   :  { %462 = vmatprep.subr.mxu0 %v86_v36 }
  0x49   :  { %497 = vmatpush3.xpose.msra.mxu1 %v103_v37 }
  0x4a   :  { %498 = vmatprep.subr.mxu1 %v118_v39 }
  0x4b   :  { %463 = vmatpush3.xpose.msra.mxu0 %v70_v38 }
  0x4c   :  { %464 = vmatprep.subr.mxu0 %v85_v40 }
  0x4d   :  { %499 = vmatpush3.xpose.msra.mxu1 %v102_v41 }
  0x4e   :  { %500 = vmatprep.subr.mxu1 %v117_v43 }
  0x4f   :  { %465 = vmatpush3.xpose.msra.mxu0 %v69_v42 }
  0x50   :  { %466 = vmatprep.subr.mxu0 %v84_v44 }
  0x51   :  { %501 = vmatpush3.xpose.msra.mxu1 %v101_v45 }
  0x52   :  { %502 = vmatprep.subr.mxu1 %v116_v47 }
  0x53   :  { %467 = vmatpush3.xpose.msra.mxu0 %v68_v46 }
  0x54   :  { %468 = vmatprep.subr.mxu0 %v83_v48 }
  0x55   :  { %503 = vmatpush3.xpose.msra.mxu1 %v100_v49 }
  0x56   :  { %504 = vmatprep.subr.mxu1 %v115_v51 }
  0x57   :  { %469 = vmatpush3.xpose.msra.mxu0 %v67_v50 }
  0x58   :  { %470 = vmatprep.subr.mxu0 %v82_v52 }
  0x59   :  { %505 = vmatpush3.xpose.msra.mxu1 %v99_v53 }
  0x5a   :  { %506 = vmatprep.subr.mxu1 %v114_v55 }
  0x5b   :  { %471 = vmatpush3.xpose.msra.mxu0 %v66_v54 }
  0x5c   :  { %472 = vmatprep.subr.mxu0 %v81_v56 }
  0x5d   :  { %507 = vmatpush3.xpose.msra.mxu1 %v98_v57 }
  0x5e   :  { %508 = vmatprep.subr.mxu1 %v113_v59 }
  0x5f   :  { %473 = vmatpush3.xpose.msra.mxu0 %v65_v58 }
  0x60   :  { %474 = vmatprep.subr.mxu0 %v80_v60 }
  0x61   :  { %509 = vmatpush3.xpose.msra.mxu1 %v97_v61 }
  0x62   :  { %510 = vmatprep.subr.mxu1 %v112_v63 }
  0x63   :  { %475 = vmatpush3.xpose.msra.mxu0 %v64_v62 }
  0x64   :  { %516 = vmatprep.subr.mxu0 %v339_v0 }
  0x65   :  { %511 = vmatpush3.xpose.msra.mxu1 %v96_v1 }
  0x66   :  { %477 = vmatmul.mubr.f32.vlgmr.msra.gmra.mxu0 %v730_v21  ;;  %554 = vmatprep.subr.mxu1 %v339_v0 }
  0x67   :  { %478 = vmatprep.mubr.f32.mxu0 %v63_v2  ;;  %517 = vmatpush3.msra.mxu0 %v323_v3 }
  0x68   :  { %518 = vmatprep.subr.mxu0 %v338_v4  ;;  %513 = vmatmul.mubr.f32.vlgmr.msra.gmra.mxu1 %v730_v21  ;;  %v314_v21 = vld [vmem:[#allocation8 + $0x30] sm:$0xff] }
  0x69   :  { %519 = vmatpush3.msra.mxu0 %v322_v5  ;;  %514 = vmatprep.mubr.f32.mxu1 %v63_v2 }
  0x6a   :  { %479 = vmatmul.mubr.f32.gmra.mxu0 %v63_v2  ;;  %570 = vmatpush3.msra.mxu1 %v323_v3 }
  0x6b   :  { %555 = vmatprep.subr.mxu1 %v338_v4  ;;  %520 = vmatprep.subr.mxu0 %v337_v6 }
  0x6c   :  { %515 = vmatmul.mubr.f32.gmra.mxu1 %v63_v2  ;;  %521 = vmatpush3.msra.mxu0 %v321_v7 }
  0x6d   :  { %571 = vmatpush3.msra.mxu1 %v322_v5  ;;  %522 = vmatprep.subr.mxu0 %v336_v8 }
  0x6e   :  { %556 = vmatprep.subr.mxu1 %v337_v6  ;;  %523 = vmatpush3.msra.mxu0 %v320_v9 }
  0x6f   :  { %572 = vmatpush3.msra.mxu1 %v321_v7  ;;  %524 = vmatprep.subr.mxu0 %v335_v10 }
  0x70   :  { %557 = vmatprep.subr.mxu1 %v336_v8  ;;  %525 = vmatpush3.msra.mxu0 %v319_v11 }
  0x71   :  { %573 = vmatpush3.msra.mxu1 %v320_v9  ;;  %526 = vmatprep.subr.mxu0 %v334_v12 }
  0x72   :  { %558 = vmatprep.subr.mxu1 %v335_v10  ;;  %527 = vmatpush3.msra.mxu0 %v318_v13 }
  0x73   :  { %574 = vmatpush3.msra.mxu1 %v319_v11  ;;  %528 = vmatprep.subr.mxu0 %v333_v14 }
  0x74   :  { %559 = vmatprep.subr.mxu1 %v334_v12  ;;  %529 = vmatpush3.msra.mxu0 %v317_v15 }
  0x75   :  { %575 = vmatpush3.msra.mxu1 %v318_v13  ;;  %530 = vmatprep.subr.mxu0 %v332_v16 }
  0x76   :  { %560 = vmatprep.subr.mxu1 %v333_v14  ;;  %531 = vmatpush3.msra.mxu0 %v316_v17 }
  0x77   :  { %576 = vmatpush3.msra.mxu1 %v317_v15  ;;  %532 = vmatprep.subr.mxu0 %v331_v18 }
  0x78   :  { %561 = vmatprep.subr.mxu1 %v332_v16  ;;  %533 = vmatpush3.msra.mxu0 %v315_v19 }
  0x79   :  { %577 = vmatpush3.msra.mxu1 %v316_v17  ;;  %534 = vmatprep.subr.mxu0 %v330_v20 }
  0x7a   :  { %562 = vmatprep.subr.mxu1 %v331_v18  ;;  %535 = vmatpush3.msra.mxu0 %v314_v21 }
  0x7b   :  { %578 = vmatpush3.msra.mxu1 %v315_v19  ;;  %536 = vmatprep.subr.mxu0 %v329_v22 }
  0x7c   :  { %563 = vmatprep.subr.mxu1 %v330_v20  ;;  %537 = vmatpush3.msra.mxu0 %v313_v23 }
  0x7d   :  { %579 = vmatpush3.msra.mxu1 %v314_v21  ;;  %538 = vmatprep.subr.mxu0 %v328_v24 }
  0x7e   :  { %564 = vmatprep.subr.mxu1 %v329_v22  ;;  %539 = vmatpush3.msra.mxu0 %v312_v25 }
  0x7f   :  { %580 = vmatpush3.msra.mxu1 %v313_v23  ;;  %540 = vmatprep.subr.mxu0 %v327_v26 }
  0x80   :  { %565 = vmatprep.subr.mxu1 %v328_v24  ;;  %541 = vmatpush3.msra.mxu0 %v311_v27 }
  0x81   :  { %581 = vmatpush3.msra.mxu1 %v312_v25  ;;  %542 = vmatprep.subr.mxu0 %v326_v28 }
  0x82   :  { %566 = vmatprep.subr.mxu1 %v327_v26  ;;  %543 = vmatpush3.msra.mxu0 %v310_v29 }
  0x83   :  { %582 = vmatpush3.msra.mxu1 %v311_v27  ;;  %544 = vmatprep.subr.mxu0 %v325_v30 }
  0x84   :  { %567 = vmatprep.subr.mxu1 %v326_v28  ;;  %545 = vmatpush3.msra.mxu0 %v309_v31 }
  0x85   :  { %583 = vmatpush3.msra.mxu1 %v310_v29  ;;  %546 = vmatprep.subr.mxu0 %v324_v32 }
  0x86   :  { %568 = vmatprep.subr.mxu1 %v325_v30  ;;  %547 = vmatpush3.msra.mxu0 %v308_v33 }
  0x87   :  { %584 = vmatpush3.msra.mxu1 %v309_v31 }
  0x88   :  { %569 = vmatprep.subr.mxu1 %v324_v32 }
  0x89   :  { %585 = vmatpush3.msra.mxu1 %v308_v33 }
 0x126   :  { %v194_v34 = vpop.f32.mrf.mxu0 }
 0x127   :  { %v282_v35 = vmul.f32 0.5, %v194_v34 }
 0x128   :  { %v196_v36 = vpop.f32.mrf.mxu0  ;;  %v271_v43 = vpop.f32.mrf.mxu1 }
 0x129   :  { %592 = vtanh.f32 %v282_v35  ;;  %v283_v37 = vmul.f32 0.5, %v196_v36 }
 0x12a   :  { %v200_v38 = vpop.f32.mrf.mxu0  ;;  %v273_v49 = vpop.f32.mrf.mxu1 }
 0x12b   :  { %594 = vtanh.f32 %v283_v37  ;;  %v284_v39 = vmul.f32 0.5, %v200_v38 }
 0x12c   :  { %v202_v40 = vpop.f32.mrf.mxu0  ;;  %v277_v57 = vpop.f32.mrf.mxu1 }
 0x12d   :  { %596 = vtanh.f32 %v284_v39  ;;  %v285_v41 = vmul.f32 0.5, %v202_v40 }
 0x12e   :  { %v279_v63 = vpop.f32.mrf.mxu1 }
 0x12f   :  { %598 = vtanh.f32 %v285_v41 }
 0x136   :  { %v593_v42 = vpop.eup %592 }
 0x137   :  { %v290_v44 = vmul.f32 0.5, %v593_v42 }
 0x138   :  { %v595_v45 = vpop.eup %594 }
 0x139   :  { %v294_v46 = vadd.f32 0.5, %v290_v44  ;;  %v291_v47 = vmul.f32 0.5, %v595_v45 }
 0x13a   :  { %v597_v48 = vpop.eup %596 }
 0x13b   :  { %v295_v50 = vadd.f32 0.5, %v291_v47  ;;  %v292_v51 = vmul.f32 0.5, %v597_v48  ;;  %v298_v53 = vmul.f32 %v294_v46, %v194_v34 }
 0x13c   :  { %v599_v52 = vpop.eup %598 }
 0x13d   :  { %v299_v54 = vmul.f32 %v295_v50, %v196_v36  ;;  %v296_v55 = vadd.f32 0.5, %v292_v51  ;;  %v293_v56 = vmul.f32 0.5, %v599_v52  ;;  %v302_v61 = vmul.f32 %v298_v53, %v271_v43 }
 0x13f   :  { %v297_v58 = vadd.f32 0.5, %v293_v56  ;;  %v303_v59 = vmul.f32 %v299_v54, %v273_v49  ;;  %v300_v60 = vmul.f32 %v296_v55, %v200_v38 }
 0x141   :  { %v301_v62 = vmul.f32 %v297_v58, %v202_v40  ;;  %404 = vmatprep.mubr.f32.mxu0 %v303_v59  ;;  %v304_v1 = vmul.f32 %v300_v60, %v277_v57 }
 0x142   :  { %405 = vmatmul.mubr.f32.vlgmr.msra.gmra.mxu0 %v302_v61 }
 0x143   :  { %v305_v0 = vmul.f32 %v301_v62, %v279_v63 }
 0x145   :  { %409 = vmatprep.mubr.f32.mxu1 %v305_v0 }
 0x146   :  { %410 = vmatmul.mubr.f32.vlgmr.msra.gmra.mxu1 %v304_v1 }
 0x202   :  { %v548_v2 = vpop.f32.mrf.mxu0 }
 0x204   :  { %v549_v3 = vpop.f32.mrf.mxu0 }
 0x205   :  { %v550_v4 = vadd.f32 %v549_v3, %v548_v2 }
 0x206   :  { %v551_v5 = vpop.f32.mrf.mxu1 }
 0x207   :  { %424 = vst [vmem:[#allocation9] sm:$0xff] %v550_v4 }
 0x208   :  { %v552_v6 = vpop.f32.mrf.mxu1 }
 0x209   :  { %v553_v7 = vadd.f32 %v552_v6, %v551_v5 }
 0x20b   :  { %425 = vst [vmem:[#allocation9 + $0x8] sm:$0xff] %v553_v7 }
 0x20c   :  { %671 = shalt.err (!%p668_p5)
}
 0x20d   :  { %437 = dma.vmem_to_hbm [thread:$0]  %s432_s2, 256, %s745_s3, [#allocation5], %s688_s17, %s688_s17, %s689_s18  }
 0x20e   :  { %684 = dma.done.wait [#allocation5], 256  }
 0x20f   :  { %685 = vsyncadd [#allocation5], 4294967040 }
 0x210   :  { %441 = vsyncpa [#allocation4], 1 }
 0x211   :  { %442 = vsyncpa [#allocation7], 1 }
 0x212   :  { %443 = vsyncpa [#allocation5], 1 }

</bundles_post_ra>
